<compile_context>
chip_gen: v7x
topology: tpu7x:2x2x1
jax: 0.10.0
libtpu: 0.0.40
codegen_flags: <defaults>
</compile_context>

<pallas_src>
import math
import numpy as np
import jax
import jax.numpy as jnp
from jax.experimental import pallas as pl
from jax.experimental.pallas import tpu as pltpu

D_MODEL = 32                    # args.d_model
W_HID = 128                     # self.W (module default 256; small demo size)
HEAD_NAMES = ("pos", "scales", "rot", "opac", "shs")
HEAD_OUT = (3, 3, 4, 1, 48)     # pos, scales, rotations, opacity, shs(16*3)
OUT_REAL = sum(HEAD_OUT)        # 59
OUT_PAD = 64                    # packed slab width (pad 59 -> 64 for lane friendliness)
N5W = len(HEAD_NAMES) * W_HID   # 640


def _round_up(x, m):
    return ((x + m - 1) // m) * m


def _default_bf16_intermediate():
    """bf16 intermediate only on chips whose VPU has bf16 ALUs (v6e/v7x)."""
    try:
        kind = jax.devices()[0].device_kind.lower()
    except Exception:
        return False
    return not any(tag in kind for tag in ("v2", "v3", "v4", "v5"))


def _make_kernel(bf16_intermediate):
    def kernel(hidden_ref, base_ref, w1_ref, b1_ref, w2_ref, b2_ref, out_ref):
        # Fused 5 heads: Sequential(ReLU, Linear(d_model, W), ReLU, Linear(W, out)).
        h = jnp.maximum(hidden_ref[...], 0)                     # bf16, ReLU is exact
        z = jnp.dot(h, w1_ref[...], preferred_element_type=jnp.float32)
        if bf16_intermediate:
            # v6e/v7x: keep the (tile, 640) intermediate in bf16 for bias+ReLU.
            zb = z.astype(jnp.bfloat16) + b1_ref[...].astype(jnp.bfloat16)
            zb = jnp.maximum(zb, 0)
        else:
            # v5e: no bf16 VPU -> keep the f32 path, single cast for the MXU.
            zb = jnp.maximum(z + b1_ref[...], 0.0).astype(jnp.bfloat16)
        delta = jnp.dot(zb, w2_ref[...],
                        preferred_element_type=jnp.float32) + b2_ref[...]
        # Default path => mask == 1, so base * mask + delta == base + delta for
        # every head (incl. rotation). Base slab is packed in the same column
        # order as delta; pad columns (59:64) are zero on both sides.
        out_ref[...] = base_ref[...] + delta
    return kernel


def _pick_tile_rows(R, requested):
    t = requested
    # Keep >=4 grid steps when R allows it (>=2 steps per v7x TensorCore and
    # room for the pipeliner to overlap DMA with compute).
    while t > 128 and pl.cdiv(R, t) < 4:
        t //= 2
    t = _round_up(t, 8)
    return max(8, min(t, _round_up(R, 8)))   # never over-allocate for tiny R


def deformation_heads(hidden_bf16, base, w1, b1, w2, b2, *,
                      tile_rows=1024, bf16_intermediate=None):
    """hidden_bf16: (R, D_MODEL) bf16; base: (R, OUT_PAD) f32 packed slab."""
    R = hidden_bf16.shape[0]
    if bf16_intermediate is None:
        bf16_intermediate = _default_bf16_intermediate()
    tile_rows = _pick_tile_rows(R, tile_rows)
    grid = (pl.cdiv(R, tile_rows),)          # edge block handled by Pallas masking

    row = lambda i: (i, 0)
    const = lambda i: (0, 0)

    flops = 2 * R * D_MODEL * N5W + 2 * R * N5W * OUT_PAD
    bytes_accessed = (R * D_MODEL * 2 + 2 * R * OUT_PAD * 4
                      + D_MODEL * N5W * 2 + N5W * 4 + N5W * OUT_PAD * 2 + OUT_PAD * 4)

    return pl.pallas_call(
        _make_kernel(bf16_intermediate),
        out_shape=jax.ShapeDtypeStruct((R, OUT_PAD), jnp.float32),
        grid_spec=pltpu.PrefetchScalarGridSpec(
            num_scalar_prefetch=0,
            grid=grid,
            in_specs=[
                pl.BlockSpec((tile_rows, D_MODEL), row),   # hidden (bf16)
                pl.BlockSpec((tile_rows, OUT_PAD), row),   # packed base slab (f32)
                pl.BlockSpec((D_MODEL, N5W), const),       # fused W1 (bf16)
                pl.BlockSpec((1, N5W), const),             # fused b1 (f32)
                pl.BlockSpec((N5W, OUT_PAD), const),       # block-diag W2 (bf16)
                pl.BlockSpec((1, OUT_PAD), const),         # packed b2 (f32)
            ],
            out_specs=pl.BlockSpec((tile_rows, OUT_PAD), row),
        ),
        compiler_params=pltpu.CompilerParams(dimension_semantics=("parallel",)),
        cost_estimate=pl.CostEstimate(flops=flops, transcendentals=0,
                                      bytes_accessed=bytes_accessed),
    )(hidden_bf16, base, w1, b1, w2, b2)


def init_head_params(key):
    """Deterministic init of the 5 deform heads (PyTorch-Linear-style uniform), f32."""
    params = {}
    keys = jax.random.split(key, 4 * len(HEAD_NAMES))
    ki = 0
    for name, out_dim in zip(HEAD_NAMES, HEAD_OUT):
        bound1 = 1.0 / math.sqrt(D_MODEL)
        bound2 = 1.0 / math.sqrt(W_HID)
        params[f"w1_{name}"] = jax.random.uniform(keys[ki], (D_MODEL, W_HID),
                                                  jnp.float32, -bound1, bound1); ki += 1
        params[f"b1_{name}"] = jax.random.uniform(keys[ki], (W_HID,),
                                                  jnp.float32, -bound1, bound1); ki += 1
        params[f"w2_{name}"] = jax.random.uniform(keys[ki], (W_HID, out_dim),
                                                  jnp.float32, -bound2, bound2); ki += 1
        params[f"b2_{name}"] = jax.random.uniform(keys[ki], (out_dim,),
                                                  jnp.float32, -bound2, bound2); ki += 1
    return params


def fuse_heads(params):
    """Concat first layers; block-diagonal second layer padded to OUT_PAD cols.

    Weights are stored in bf16 (MXU operands); biases stay f32 (added to f32 accum,
    or cast to bf16 in-kernel on the bf16-intermediate path).
    """
    w1 = jnp.concatenate([params[f"w1_{n}"] for n in HEAD_NAMES], axis=1)      # (D, 5W)
    b1 = jnp.concatenate([params[f"b1_{n}"] for n in HEAD_NAMES], axis=0)[None, :]
    w2 = jnp.zeros((N5W, OUT_PAD), jnp.float32)
    b2 = jnp.zeros((1, OUT_PAD), jnp.float32)
    col = 0
    for k, (n, o) in enumerate(zip(HEAD_NAMES, HEAD_OUT)):
        w2 = w2.at[k * W_HID:(k + 1) * W_HID, col:col + o].set(params[f"w2_{n}"])
        b2 = b2.at[0, col:col + o].set(params[f"b2_{n}"])
        col += o
    return w1.astype(jnp.bfloat16), b1, w2.astype(jnp.bfloat16), b2


def deformation_forward_dynamic_batch(hidden, rays_pts_emb, scales_emb, rotations_emb,
                                      opacity_emb, shs_emb, fused_params, attention=None,
                                      *, tile_rows=1024, bf16_intermediate=None):
    """Mirrors Deformation.forward_dynamic_batch for the default-args path."""
    B, N, _ = hidden.shape
    R = B * N
    w1, b1, w2, b2 = fused_params

    # Pack the narrow bases into one lane-dense slab, column-aligned with the fused
    # delta layout (cols 59..63 are zero padding). Only rays_pts[..., :3] is packed,
    # so the other 24 embedding channels are never read by the kernel.
    base = jnp.concatenate([
        rays_pts_emb[..., :3],
        scales_emb[..., :3],
        rotations_emb[..., :4],
        opacity_emb[..., :1],
        shs_emb.reshape(B, N, 48),
        jnp.zeros((B, N, OUT_PAD - OUT_REAL), jnp.float32),
    ], axis=-1).reshape(R, OUT_PAD)

    # TODO(synk): the upstream attention producer should emit bf16 hidden directly;
    # the cast here is a no-op if it already does.
    hidden_bf16 = hidden.reshape(R, D_MODEL).astype(jnp.bfloat16)

    out = deformation_heads(hidden_bf16, base, w1, b1, w2, b2,
                            tile_rows=tile_rows, bf16_intermediate=bf16_intermediate)
    out = out.reshape(B, N, OUT_PAD)
    pts = out[..., 0:3]
    scales = out[..., 3:6]
    rotations = out[..., 6:10]
    opacity = out[..., 10:11]
    shs = out[..., 11:11 + 48].reshape(B, N, 16, 3)
    return pts, scales, rotations, opacity, shs, attention


def _reference(hidden, rays_pts_emb, scales_emb, rotations_emb, opacity_emb, shs_emb, params):
    """Pure-JAX f32 reference (same math as the PyTorch heads, default-args path)."""
    def head(name):
        h = jnp.maximum(hidden, 0.0)
        z = jnp.maximum(h @ params[f"w1_{name}"] + params[f"b1_{name}"], 0.0)
        return z @ params[f"w2_{name}"] + params[f"b2_{name}"]
    B, N, _ = hidden.shape
    mask = jnp.ones_like(opacity_emb[:, :, 0])[..., None]
    pts = rays_pts_emb[..., :3] * mask + head("pos")
    scales = scales_emb[..., :3] * mask + head("scales")
    rotations = rotations_emb[..., :4] + head("rot")
    opacity = opacity_emb[..., :1] * mask + head("opac")
    shs = shs_emb * mask[..., None] + head("shs").reshape(B, N, 16, 3)
    return pts, scales, rotations, opacity, shs


if __name__ == "__main__":
    key = jax.random.PRNGKey(0)
    kh, kr, ks, kq, ko, kc, kp = jax.random.split(key, 7)
    # B*N = 600 is intentionally NOT a power-of-two multiple -> exercises the
    # tile-shrink (>=4 grid steps) and cdiv / edge-block paths.
    B, N = 2, 300

    # hidden stands in for the output of attention_query_audio_batch (see TODO above).
    hidden = jax.random.normal(kh, (B, N, D_MODEL), jnp.float32)
    rays_pts_emb = jax.random.normal(kr, (B, N, 27), jnp.float32)   # input_ch=27; only [..., :3] used
    scales_emb = jax.random.normal(ks, (B, N, 3), jnp.float32)
    rotations_emb = jax.random.normal(kq, (B, N, 4), jnp.float32)
    opacity_emb = jax.random.normal(ko, (B, N, 1), jnp.float32)
    shs_emb = jax.random.normal(kc, (B, N, 16, 3), jnp.float32)

    params = init_head_params(kp)
    fused = fuse_heads(params)

    outs = deformation_forward_dynamic_batch(
        hidden, rays_pts_emb, scales_emb, rotations_emb, opacity_emb, shs_emb, fused)
    outs = jax.block_until_ready(outs)
    pts, scales, rotations, opacity, shs, _ = outs

    ref = _reference(hidden, rays_pts_emb, scales_emb, rotations_emb,
                     opacity_emb, shs_emb, params)
    # bf16 MXU operands (and bf16 hidden/intermediate) with f32 accumulation ->
    # loosened tolerance vs the f32 reference.
    for got, want in zip((pts, scales, rotations, opacity, shs), ref):
        np.testing.assert_allclose(np.asarray(got), np.asarray(want), atol=3e-2, rtol=3e-2)

    print("KERNEL_OK")
</pallas_src>

<mosaic_0001>
module attributes {stable_mosaic.version = 11 : i64} {
  func.func @kernel(%arg0: i32, %arg1: memref<128x32xbf16, #tpu.memory_space<vmem>>, %arg2: memref<128x64xf32, #tpu.memory_space<vmem>>, %arg3: memref<32x640xbf16, #tpu.memory_space<vmem>>, %arg4: memref<1x640xf32, #tpu.memory_space<vmem>>, %arg5: memref<640x64xbf16, #tpu.memory_space<vmem>>, %arg6: memref<1x64xf32, #tpu.memory_space<vmem>>, %arg7: memref<128x64xf32, #tpu.memory_space<vmem>>) attributes {dimension_semantics = [#tpu.dimension_semantics<parallel>], iteration_bounds = array<i64: 5>, scalar_prefetch = 0 : i64, scratch_operands = 0 : i64, tpu.core_type = #tpu.core_type<tc>, window_params = [{transform_indices = @transform_0, window_bounds = array<i64: 128, 32>}, {transform_indices = @transform_1, window_bounds = array<i64: 128, 64>}, {pipeline_mode = #tpu.pipeline_mode<synchronous>, transform_indices = @transform_2, window_bounds = array<i64: 32, 640>}, {pipeline_mode = #tpu.pipeline_mode<synchronous>, transform_indices = @transform_3, window_bounds = array<i64: 1, 640>}, {pipeline_mode = #tpu.pipeline_mode<synchronous>, transform_indices = @transform_4, window_bounds = array<i64: 640, 64>}, {pipeline_mode = #tpu.pipeline_mode<synchronous>, transform_indices = @transform_5, window_bounds = array<i64: 1, 64>}, {transform_indices = @transform_6, window_bounds = array<i64: 128, 64>}]} {
    %c0 = arith.constant 0 : index
    %c0_0 = arith.constant 0 : index
    %0 = vector.load %arg1[%c0, %c0_0] : memref<128x32xbf16, #tpu.memory_space<vmem>>, vector<128x32xbf16>
    %cst = arith.constant 0.000000e+00 : bf16
    %1 = vector.broadcast %cst : bf16 to vector<128x32xbf16>
    %2 = arith.maximumf %0, %1 : vector<128x32xbf16>
    %c0_1 = arith.constant 0 : index
    %c0_2 = arith.constant 0 : index
    %3 = vector.load %arg3[%c0_1, %c0_2] : memref<32x640xbf16, #tpu.memory_space<vmem>>, vector<32x640xbf16>
    %cst_3 = arith.constant dense<0.000000e+00> : vector<128x640xf32>
    %4 = tpu.matmul %2, %3, %cst_3 {dimension_numbers = #tpu.dot_dimension_numbers<[1], [0], [0], [1], [0, 0, 1, 1], [], []>} : vector<128x32xbf16>, vector<32x640xbf16>, vector<128x640xf32> -> vector<128x640xf32>
    %5 = arith.truncf %4 : vector<128x640xf32> to vector<128x640xbf16>
    %c0_4 = arith.constant 0 : index
    %c0_5 = arith.constant 0 : index
    %6 = vector.load %arg4[%c0_4, %c0_5] : memref<1x640xf32, #tpu.memory_space<vmem>>, vector<1x640xf32>
    %7 = arith.truncf %6 : vector<1x640xf32> to vector<1x640xbf16>
    %8 = vector.broadcast %7 : vector<1x640xbf16> to vector<128x640xbf16>
    %9 = arith.addf %5, %8 : vector<128x640xbf16>
    %cst_6 = arith.constant 0.000000e+00 : bf16
    %10 = vector.broadcast %cst_6 : bf16 to vector<128x640xbf16>
    %11 = arith.maximumf %9, %10 : vector<128x640xbf16>
    %c0_7 = arith.constant 0 : index
    %c0_8 = arith.constant 0 : index
    %12 = vector.load %arg5[%c0_7, %c0_8] : memref<640x64xbf16, #tpu.memory_space<vmem>>, vector<640x64xbf16>
    %cst_9 = arith.constant dense<0.000000e+00> : vector<128x64xf32>
    %13 = tpu.matmul %11, %12, %cst_9 {dimension_numbers = #tpu.dot_dimension_numbers<[1], [0], [0], [1], [0, 0, 1, 1], [], []>} : vector<128x640xbf16>, vector<640x64xbf16>, vector<128x64xf32> -> vector<128x64xf32>
    %c0_10 = arith.constant 0 : index
    %c0_11 = arith.constant 0 : index
    %14 = vector.load %arg6[%c0_10, %c0_11] : memref<1x64xf32, #tpu.memory_space<vmem>>, vector<1x64xf32>
    %15 = vector.broadcast %14 : vector<1x64xf32> to vector<128x64xf32>
    %16 = arith.addf %13, %15 : vector<128x64xf32>
    %c0_12 = arith.constant 0 : index
    %c0_13 = arith.constant 0 : index
    %17 = vector.load %arg2[%c0_12, %c0_13] : memref<128x64xf32, #tpu.memory_space<vmem>>, vector<128x64xf32>
    %18 = arith.addf %17, %16 : vector<128x64xf32>
    %c0_14 = arith.constant 0 : index
    %c0_15 = arith.constant 0 : index
    %19 = vector.load %arg7[%c0_14, %c0_15] : memref<128x64xf32, #tpu.memory_space<vmem>>, vector<128x64xf32>
    tpu.vector_store %arg7[%c0_14, %c0_15], %18 {strides = array<i32>} : memref<128x64xf32, #tpu.memory_space<vmem>>, vector<128x64xf32>,
    return
  }
  func.func @transform_0(%arg0: i32) -> (i32, i32) {
    %c0_i32 = arith.constant 0 : i32
    %c0_i32_0 = arith.constant 0 : i32
    return %arg0, %c0_i32 : i32, i32
  }
  func.func @transform_1(%arg0: i32) -> (i32, i32) {
    %c0_i32 = arith.constant 0 : i32
    %c0_i32_0 = arith.constant 0 : i32
    return %arg0, %c0_i32 : i32, i32
  }
  func.func @transform_2(%arg0: i32) -> (i32, i32) {
    %c0_i32 = arith.constant 0 : i32
    %c0_i32_0 = arith.constant 0 : i32
    %c0_i32_1 = arith.constant 0 : i32
    return %c0_i32, %c0_i32_0 : i32, i32
  }
  func.func @transform_3(%arg0: i32) -> (i32, i32) {
    %c0_i32 = arith.constant 0 : i32
    %c0_i32_0 = arith.constant 0 : i32
    %c0_i32_1 = arith.constant 0 : i32
    return %c0_i32, %c0_i32_0 : i32, i32
  }
  func.func @transform_4(%arg0: i32) -> (i32, i32) {
    %c0_i32 = arith.constant 0 : i32
    %c0_i32_0 = arith.constant 0 : i32
    %c0_i32_1 = arith.constant 0 : i32
    return %c0_i32, %c0_i32_0 : i32, i32
  }
  func.func @transform_5(%arg0: i32) -> (i32, i32) {
    %c0_i32 = arith.constant 0 : i32
    %c0_i32_0 = arith.constant 0 : i32
    %c0_i32_1 = arith.constant 0 : i32
    return %c0_i32, %c0_i32_0 : i32, i32
  }
  func.func @transform_6(%arg0: i32) -> (i32, i32) {
    %c0_i32 = arith.constant 0 : i32
    %c0_i32_0 = arith.constant 0 : i32
    return %arg0, %c0_i32 : i32, i32
  }
}

</mosaic_0001>

<bundles_post_ra>
// kernel: tpu_custom_call.1
= control target key start
LH: loop header
LB: loop body
LE: loop exit
PB: predicated region body
PF: predicated region fallthrough
CT: control target
= control target key end

     0   :  { %s2526_s21 = smov 0   ;;  %s2528_s22 = smov 0   ;;  %s3130_s0 = inlined_call_operand.vmem [shape: bf16[600,32], index: 0, kind: input, shape index: {}]   ;;  %s3131_s1 = inlined_call_operand.vmem [shape: f32[600,64], index: 1, kind: input, shape index: {}]   ;;  %s3132_s2 = inlined_call_operand.vmem [shape: bf16[32,640], index: 2, kind: input, shape index: {}]   ;;  %s3133_s3 = inlined_call_operand.vmem [shape: f32[1,640], index: 3, kind: input, shape index: {}]   ;;  %s3134_s4 = inlined_call_operand.vmem [shape: bf16[640,64], index: 4, kind: input, shape index: {}]   ;;  %s3135_s5 = inlined_call_operand.vmem [shape: f32[1,64], index: 5, kind: input, shape index: {}]   ;;  %s3136_s6 = inlined_call_operand.vmem [shape: f32[600,64], index: 6, kind: output, shape index: {}]  }
   0x1   :  { %s2530_s23 = smov 0  }
   0x2 LB: > { %s2539_s24 = sadd.s32 4294967295, %s2456_s23   ;;  %s2541_s25 = sadd.s32 1, %s2456_s23   ;;  %s2456_s23 = sphi %s2530_s23, %s3143_s23   ;;  %s2452_s22 = sphi %s2528_s22, %s3142_s22   ;;  %s2448_s21 = sphi %s2526_s21, %s3141_s21  }
   0x3   : > { %s156_s26 = ssub.s32 %s2456_s23, %s2541_s25  ;;  %s159_s27 = sadd.s32 1, %s2452_s22 }
   0x4   : > { %p157_p0 = scmp.eq.s32.totalorder %s156_s26, 0  ;;  %p169_p1 = scmp.ne.s32.totalorder %s2452_s22, %s2448_s21 }
   0x5   : > { %p170_p2 = scmp.eq.s32.totalorder %s2539_s24, 4  ;;  %p1944_p3 = scmp.ge.s32.totalorder %s2456_s23, 1 }
   0x6   : > { %s2549_s28 = scalar_select %p157_p0, %s2452_s22, %s159_s27  }
   0x7   : > { %p2551_p4 = por %p170_p2, %p169_p1  ;;  %p240_p5 = scmp.lt.s32.totalorder %s2456_s23, 6 }
   0x9   : > { %p241_p6 = pnand %p1944_p3, %p240_p5 }
   0xa   : > { %v2348_v0 = vld [vmem:[%s3132_s2 + $0x4] ss:$20 sps:$4 sm:$0xff] (!%p241_p6)   ;;  %s2559_s8 = sshll.u32 (!%p241_p6), %s2539_s24, 4  ;;  %v2350_v1 = vld [vmem:[%s3132_s2] ss:$20 sps:$4 sm:$0xff] (!%p241_p6)   ;;  %v2490_v2 = vmov (!%p241_p6), 0  }
   0xb   : > { %244 = sbr.rel (%p241_p6) target bundleno = 606 (0x25e), region = 44  ;;  %509 = vmatprep.mubr.bf16.mxu0 (!%p241_p6), %v2490_v2  ;;  %p287_p7 = scmp.lt.s32.totalorder (!%p241_p6), %s2559_s8, 74  ;;  %622 = vmatprep.mubr.bf16.mxu1 (!%p241_p6), %v2490_v2  ;;  %v2351_v3 = vld [vmem:[%s3132_s2 + $0xc] ss:$20 sps:$4 sm:$0xff] (!%p241_p6)   ;;  %v2355_v5 = vld [vmem:[%s3132_s2 + $0x8] ss:$20 sps:$4 sm:$0xff] (!%p241_p6)  }
   0xc   : > { %477 = vmatprep.subr.bf16.mxu0 (!%p241_p6), %v2348_v0  ;;  %v2353_v4 = vld [vmem:[%s3132_s2 + $0x2c] ss:$20 sps:$4 sm:$0xff] (!%p241_p6)   ;;  %v2356_v6 = vld [vmem:[%s3132_s2 + $0x28] ss:$20 sps:$4 sm:$0xff] (!%p241_p6)   ;;  %590 = vmatprep.subr.bf16.mxu1 (!%p241_p6), %v2351_v3  ;;  %v2359_v8 = vld [vmem:[%s3132_s2 + $0x30] ss:$20 sps:$4 sm:$0xff] (!%p241_p6)  }
   0xd   : > { %478 = vmatpush1.bf16.msra.mxu0 (!%p241_p6), %v2350_v1  ;;  %v2357_v7 = vld [vmem:[%s3132_s2 + $0x34] ss:$20 sps:$4 sm:$0xff] (!%p241_p6)   ;;  %591 = vmatpush1.bf16.msra.mxu1 (!%p241_p6), %v2355_v5  ;;  %v2360_v9 = vld [vmem:[%s3132_s2 + $0x10] ss:$20 sps:$4 sm:$0xff] (!%p241_p6)   ;;  %vm452_vm0 = vcmask (!%p241_p6), 261120   ;;  %v2368_v31 = vld [vmem:[%s3134_s4 + $0x58] sm:$0xff] (!%p241_p6)  }
   0xe   : > { %479 = vmatprep.subr.bf16.mxu0 (!%p241_p6), %v2353_v4  ;;  %592 = vmatprep.subr.bf16.mxu1 (!%p241_p6), %v2357_v7  ;;  %v2362_v10 = vld [vmem:[%s3134_s4 + $0x40] sm:$0xff] (!%p241_p6)   ;;  %v2361_v18 = vld [vmem:[%s3132_s2 + $0x38] ss:$20 sps:$4 sm:$0xff] (!%p241_p6)   ;;  %v2366_v27 = vld [vmem:[%s3134_s4 + $0x50] sm:$0xff] (!%p241_p6)   ;;  %s279_s26 = sand.u32 (!%p241_p6), 1, %s2448_s21   ;;  %vm1637_vm1 = vcmask (!%p241_p6), 523264  }
   0xf   : > { %v2363_v21 = vld [vmem:[%s3134_s4] sm:$0xff] (!%p241_p6)   ;;  %v2364_v22 = vld [vmem:[%s3134_s4 + $0x48] sm:$0xff] (!%p241_p6)   ;;  %v2367_v28 = vld [vmem:[%s3134_s4 + $0x10] sm:$0xff] (!%p241_p6)  }
  0x10   : > { %v2365_v23 = vld [vmem:[%s3134_s4 + $0x8] sm:$0xff] (!%p241_p6)   ;;  %v2372_v32 = vld [vmem:[%s3134_s4 + $0xc0] sm:$0xff] (!%p241_p6)   ;;  %v2369_v33 = vld [vmem:[%s3134_s4 + $0x18] sm:$0xff] (!%p241_p6)  }
  0x11   : > { %480 = vmatpush1.bf16.msra.mxu0 (!%p241_p6), %v2356_v6  ;;  %593 = vmatpush1.bf16.msra.mxu1 (!%p241_p6), %v2359_v8  ;;  %v2370_v37 = vld [vmem:[%s3134_s4 + $0x60] sm:$0xff] (!%p241_p6)   ;;  %v2375_v41 = vld [vmem:[%s3134_s4 + $0x68] sm:$0xff] (!%p241_p6)   ;;  %v2381_v46 = vld [vmem:[%s3134_s4 + $0x70] sm:$0xff] (!%p241_p6)  }
  0x12   : > { %s2583_s23 = scalar_select %p287_p7, %s2559_s8, 74  ;;  %2207 = vmatprep.subr.bf16.mxu0 %v2360_v9  ;;  %2063 = vmatprep.subr.bf16.mxu1 %v2362_v10  ;;  %v2371_v38 = vld [vmem:[%s3134_s4 + $0x20] sm:$0xff]   ;;  %v2377_v42 = vld [vmem:[%s3134_s4 + $0x28] sm:$0xff]   ;;  %v2383_v47 = vld [vmem:[%s3134_s4 + $0x30] sm:$0xff]  }
  0x13   : > { %v2373_v3 = vld [vmem:[%s3134_s4 + $0x80] sm:$0xff]   ;;  %v2374_v4 = vld [vmem:[%s3134_s4 + $0xc8] sm:$0xff]   ;;  %v2378_v6 = vld [vmem:[%s3134_s4 + $0xd0] sm:$0xff]   ;;  %s2050_s10 = sshll.u32 (%p2551_p4), %s2539_s24, 7 }
  0x14   : > { %s1947_s9 = sshll.u32 %s2583_s23, 2  ;;  %v2376_v5 = vld [vmem:[%s3134_s4 + $0x88] sm:$0xff]   ;;  %v2379_v7 = vld [vmem:[%s3134_s4 + $0x90] sm:$0xff]   ;;  %v2380_v8 = vld [vmem:[%s3134_s4 + $0xd8] sm:$0xff]   ;;  %s1949_s20 = sshll.u32 %s2583_s23, 3 }
  0x15   : > { %s2598_s14 = scalar_lea.vmem %s3130_s0, %s1947_s9  ;;  %v2384_v10 = vld [vmem:[%s3134_s4 + $0xe0] sm:$0xff]   ;;  %s2957_s7 = scalar_lea.vmem %s3131_s1, %s1949_s20 }
  0x16   : > { %v316_v11 = vld [vmem:[%s2598_s14] sm:$0xf]  ;;  %v317_v12 = vld [vmem:[%s2598_s14 + $0x4] sm:$0xf]  ;;  %v318_v15 = vld [vmem:[%s2598_s14 + $0x8] sm:$0xf]  ;;  %s3037_s13 = scalar_lea.vmem (%p2551_p4), %s3136_s6, %s2050_s10  }
  0x17   : > { %v332_v13 = vmax.bf16 %v2490_v2, %v316_v11  ;;  %v333_v14 = vmax.bf16 %v2490_v2, %v317_v12  ;;  %v319_v16 = vld [vmem:[%s2598_s14 + $0xc] sm:$0xf]  ;;  %v334_v19 = vmax.bf16 %v2490_v2, %v318_v15  ;;  %v320_v25 = vld [vmem:[%s2598_s14 + $0x10] sm:$0xf]  ;;  %v321_v26 = vld [vmem:[%s2598_s14 + $0x14] sm:$0xf] }
  0x18   : > { %v335_v20 = vmax.bf16 %v2490_v2, %v319_v16  ;;  %v336_v29 = vmax.bf16 %v2490_v2, %v320_v25  ;;  %v337_v30 = vmax.bf16 %v2490_v2, %v321_v26  ;;  %v322_v35 = vld [vmem:[%s2598_s14 + $0x18] sm:$0xf]  ;;  %v323_v36 = vld [vmem:[%s2598_s14 + $0x1c] sm:$0xf]  ;;  %v324_v44 = vld [vmem:[%s2598_s14 + $0x20] sm:$0xf] }
  0x19   : > { %v2606_v17 = vcombine.low %v332_v13, %v333_v14  ;;  %v338_v39 = vmax.bf16 %v2490_v2, %v322_v35  ;;  %v339_v40 = vmax.bf16 %v2490_v2, %v323_v36  ;;  %v325_v45 = vld [vmem:[%s2598_s14 + $0x24] sm:$0xf]  ;;  %v340_v48 = vmax.bf16 %v2490_v2, %v324_v44  ;;  %v326_v50 = vld [vmem:[%s2598_s14 + $0x28] sm:$0xf]  ;;  %v327_v51 = vld [vmem:[%s2598_s14 + $0x2c] sm:$0xf] }
  0x1a   : > { %v2628_v24 = vcombine.low %v334_v19, %v335_v20  ;;  %v2655_v34 = vcombine.low %v336_v29, %v337_v30  ;;  %v341_v49 = vmax.bf16 %v2490_v2, %v325_v45  ;;  %v342_v53 = vmax.bf16 %v2490_v2, %v326_v50  ;;  %v328_v56 = vld [vmem:[%s2598_s14 + $0x30] sm:$0xf]  ;;  %v329_v57 = vld [vmem:[%s2598_s14 + $0x34] sm:$0xf]  ;;  %v330_v61 = vld [vmem:[%s2598_s14 + $0x38] sm:$0xf] }
  0x1b   : > { %1968 = vmatmul.mubr.msk.bf16.vlgmr.msra.gmra.mrb[0].mxu0 %vm452_vm0, %v2606_v17  ;;  %1976 = vmatmul.mubr.msk.bf16.vlgmr.msra.gmra.mrb[0].mxu1 %vm452_vm0, %v2606_v17  ;;  %v1953_v43 = vcombine.low %v338_v39, %v339_v40  ;;  %v343_v54 = vmax.bf16 %v2490_v2, %v327_v51  ;;  %v344_v58 = vmax.bf16 %v2490_v2, %v328_v56  ;;  %v331_v62 = vld [vmem:[%s2598_s14 + $0x3c] sm:$0xf]  ;;  %v2385_v11 = vld [vmem:[%s3134_s4 + $0xa0] sm:$0xff]   ;;  %v2386_v12 = vld [vmem:[%s3134_s4 + $0xe8] sm:$0xff]   ;;  %s1945_s23 = sshll.u32 %s279_s26, 7  ;;  %s1662_s9 = ssub.s32 (%p2551_p4), 75, %s2559_s8 }
  0x1c   : > { %2208 = vmatpush3.bf16.msra.mxu0 %v2360_v9  ;;  %519 = vmatprep.mubr.bf16.mxu0 %v2490_v2  ;;  %v1954_v52 = vcombine.low %v340_v48, %v341_v49  ;;  %v345_v59 = vmax.bf16 %v2490_v2, %v329_v57  ;;  %v346_v63 = vmax.bf16 %v2490_v2, %v330_v61  ;;  %v2382_v9 = vld [vmem:[%s3134_s4 + $0x98] sm:$0xff]   ;;  %v2388_v13 = vld [vmem:[%s3134_s4 + $0xa8] sm:$0xff]   ;;  %v2390_v14 = vld [vmem:[%s3134_s4 + $0xf0] sm:$0xff]   ;;  %s2972_s21 = scalar_lea.vmem [#allocation2], %s1945_s23   ;;  %p1663_p8 = scmp.lt.s32.totalorder (%p2551_p4), %s1662_s9, 16 }
  0x1d   : > { %632 = vmatprep.mubr.bf16.mxu1 %v2490_v2  ;;  %2209 = vmatprep.subr.bf16.mxu0 %v2361_v18  ;;  %v1955_v55 = vcombine.low %v342_v53, %v343_v54  ;;  %v347_v0 = vmax.bf16 %v2490_v2, %v331_v62  ;;  %v2391_v15 = vld [vmem:[%s3134_s4 + $0xb0] sm:$0xff]   ;;  %v2387_v16 = vld [vmem:[%s3134_s4 + $0x78] sm:$0xff]   ;;  %v2784_v20 = vld [vmem:[%s3134_s4 + $0x100] sm:$0xff]  }
  0x1e   : > { %2064 = vmatpush3.bf16.msra.mxu1 %v2363_v21  ;;  %v1956_v60 = vcombine.low %v344_v58, %v345_v59  ;;  %v2393_v19 = vld [vmem:[%s3134_s4 + $0xb8] sm:$0xff]   ;;  %v842_v21 = vlaneseq }
  0x1f   : > { %2065 = vmatprep.subr.bf16.mxu1 %v2364_v22  ;;  %v1957_v1 = vcombine.low %v346_v63, %v347_v0 }
  0x20   : > { %2210 = vmatpush3.bf16.msra.mxu0 %v2361_v18  ;;  %v2392_v18 = vld [vmem:[%s3134_s4 + $0xf8] sm:$0xff]   ;;  %v843_v22 = vshrl.u32 %v842_v21, 7 }
  0x21   : > { %2127 = vmatprep.subr.bf16.mxu0 %v2372_v32 }
  0x22   : > { %2066 = vmatpush3.bf16.msra.mxu1 %v2365_v23  ;;  %v860_v23 = vsub.s32 4, %v843_v22  ;;  %v2792_v26 = vsub.s32 0, %v843_v22  ;;  %v856_v29 = vsub.s32 3, %v843_v22 }
  0x23   : > { %1969 = vmatmul.mubr.msk.bf16.gmra.mrb[4].mxu0 %vm452_vm0, %v2628_v24  ;;  %1977 = vmatmul.mubr.msk.bf16.gmra.mrb[4].mxu1 %vm452_vm0, %v2628_v24 }
  0x24   : > { %529 = vmatprep.mubr.bf16.mxu0 %v2490_v2  ;;  %642 = vmatprep.mubr.bf16.mxu1 %v2490_v2 }
  0x25   : > { %2067 = vmatprep.subr.bf16.mxu1 %v2366_v27  ;;  %v852_v27 = vsub.s32 2, %v843_v22 }
  0x26   : > { %2068 = vmatpush3.bf16.msra.mxu1 %v2367_v28  ;;  %v848_v28 = vsub.s32 1, %v843_v22 }
  0x27   : > { %2069 = vmatprep.subr.bf16.mxu1 %v2368_v31 }
  0x2a   : > { %2070 = vmatpush3.bf16.msra.mxu1 %v2369_v33 }
  0x2b   : > { %1970 = vmatmul.mubr.msk.bf16.gmra.mrb[8].mxu0 %vm452_vm0, %v2655_v34  ;;  %1978 = vmatmul.mubr.msk.bf16.gmra.mrb[8].mxu1 %vm452_vm0, %v2655_v34 }
  0x2c   : > { %539 = vmatprep.mubr.bf16.mxu0 %v2490_v2  ;;  %652 = vmatprep.mubr.bf16.mxu1 %v2490_v2 }
  0x2d   : > { %2071 = vmatprep.subr.bf16.mxu1 %v2370_v37 }
  0x2e   : > { %2072 = vmatpush3.bf16.msra.mxu1 %v2371_v38 }
  0x2f   : > { %2073 = vmatprep.subr.bf16.mxu1 %v2375_v41 }
  0x32   : > { %2074 = vmatpush3.bf16.msra.mxu1 %v2377_v42 }
  0x33   : > { %1971 = vmatmul.mubr.msk.bf16.gmra.mrb[12].mxu0 %vm452_vm0, %v1953_v43  ;;  %1979 = vmatmul.mubr.msk.bf16.gmra.mrb[12].mxu1 %vm452_vm0, %v1953_v43 }
  0x34   : > { %549 = vmatprep.mubr.bf16.mxu0 %v2490_v2  ;;  %662 = vmatprep.mubr.bf16.mxu1 %v2490_v2 }
  0x35   : > { %2075 = vmatprep.subr.bf16.mxu1 %v2381_v46 }
  0x36   : > { %2076 = vmatpush3.bf16.msra.mxu1 %v2383_v47 }
  0x37   : > { %2077 = vmatprep.subr.bf16.mxu1 %v2387_v16 }
  0x3b   : > { %1972 = vmatmul.mubr.msk.bf16.gmra.mrb[16].mxu0 %vm452_vm0, %v1954_v52  ;;  %1980 = vmatmul.mubr.msk.bf16.gmra.mrb[16].mxu1 %vm452_vm0, %v1954_v52 }
  0x3c   : > { %559 = vmatprep.mubr.bf16.mxu0 %v2490_v2  ;;  %672 = vmatprep.mubr.bf16.mxu1 %v2490_v2 }
  0x43   : > { %1973 = vmatmul.mubr.msk.bf16.gmra.mrb[20].mxu0 %vm452_vm0, %v1955_v55  ;;  %1981 = vmatmul.mubr.msk.bf16.gmra.mrb[20].mxu1 %vm452_vm0, %v1955_v55 }
  0x44   : > { %569 = vmatprep.mubr.bf16.mxu0 %v2490_v2  ;;  %682 = vmatprep.mubr.bf16.mxu1 %v2490_v2 }
  0x4b   : > { %1974 = vmatmul.mubr.msk.bf16.gmra.mrb[24].mxu0 %vm452_vm0, %v1956_v60  ;;  %1982 = vmatmul.mubr.msk.bf16.gmra.mrb[24].mxu1 %vm452_vm0, %v1956_v60 }
  0x4c   : > { %579 = vmatprep.mubr.bf16.mxu0 %v2490_v2  ;;  %692 = vmatprep.mubr.bf16.mxu1 %v2490_v2 }
  0x53   : > { %1975 = vmatmul.mubr.msk.bf16.gmra.mrb[28].mxu0 %vm452_vm0, %v1957_v1  ;;  %1983 = vmatmul.mubr.msk.bf16.gmra.mrb[28].mxu1 %vm452_vm0, %v1957_v1 }
  0x54   : > { %2211 = vmatprep.mubr.msk.bf16.mxu0 %vm452_vm0, %v2606_v17  ;;  %v2389_v17 = vld [vmem:[%s3134_s4 + $0x38] sm:$0xff]  }
  0x55   : > { %2078 = vmatpush3.bf16.msra.mxu1 %v2389_v17 }
  0x56   : > { %2227 = vmatprep.subr.bf16.mxu1 %v2784_v20 }
  0x5b   : > { %2212 = vmatmul.mubr.msk.bf16.vlgmr.msra.gmra.mrb[32].mxu0 %vm452_vm0, %v2628_v24  ;;  %v840_v24 = vld [vmem:[%s3133_s3] sm:$0x1f] }
  0x5c   : > { %2215 = vmatprep.mubr.msk.bf16.mxu0 %vm452_vm0, %v2655_v34  ;;  %2128 = vmatpush3.bf16.msra.mxu0 %v2373_v3  ;;  %v2790_v25 = vrot.slane %v840_v24, %v860_v23  ;;  %v845_v30 = vrot.slane %v840_v24, %v2792_v26  ;;  %v853_v31 = vrot.slane %v840_v24, %v852_v27 }
  0x5d   : > { %2129 = vmatprep.subr.bf16.mxu0 %v2374_v4  ;;  %v849_v32 = vrot.slane %v840_v24, %v848_v28  ;;  %v857_v33 = vrot.slane %v840_v24, %v856_v29 }
  0x5e   : > { %v867_v34 = vpack.c.bf16 %v845_v30, %v845_v30  ;;  %v869_v35 = vpack.c.bf16 %v853_v31, %v853_v31  ;;  %v2397_v31 = vld [vmem:[%s3134_s4 + $0x118] sm:$0xff]  }
  0x5f   : > { %v868_v36 = vpack.c.bf16 %v849_v32, %v849_v32  ;;  %v870_v37 = vpack.c.bf16 %v857_v33, %v857_v33 }
  0x60   : > { %2130 = vmatpush3.bf16.msra.mxu0 %v2376_v5  ;;  %v873_v38 = vpack.i.b16 %v867_v34, %v867_v34  ;;  %v887_v39 = vpack.i.b16 %v869_v35, %v869_v35 }
  0x61   : > { %2131 = vmatprep.subr.bf16.mxu0 %v2378_v6  ;;  %v880_v40 = vpack.i.b16 %v868_v36, %v868_v36  ;;  %v894_v41 = vpack.i.b16 %v870_v37, %v870_v37 }
  0x62   : > { %v2796_v45 = vrot.slane %v873_v38, %v2792_v26  ;;  %v2799_v47 = vrot.slane %v887_v39, %v2792_v26 }
  0x63   : > { %2216 = vmatmul.mubr.msk.bf16.gmra.mrb[36].mxu0 %vm452_vm0, %v1953_v43  ;;  %v2802_v49 = vrot.slane %v880_v40, %v2792_v26  ;;  %v2805_v51 = vrot.slane %v894_v41, %v2792_v26 }
  0x64   : > { %2219 = vmatprep.mubr.msk.bf16.mxu0 %vm452_vm0, %v1954_v52  ;;  %2132 = vmatpush3.bf16.msra.mxu0 %v2379_v7  ;;  %v2395_v7 = vld [vmem:[%s3134_s4 + $0x108] sm:$0xff]  }
  0x65   : > { %2133 = vmatprep.subr.bf16.mxu0 %v2380_v8 }
  0x68   : > { %2134 = vmatpush3.bf16.msra.mxu0 %v2382_v9 }
  0x69   : > { %2135 = vmatprep.subr.bf16.mxu0 %v2384_v10 }
  0x6b   : > { %2220 = vmatmul.mubr.msk.bf16.gmra.mrb[40].mxu0 %vm452_vm0, %v1955_v55 }
  0x6c   : > { %2223 = vmatprep.mubr.msk.bf16.mxu0 %vm452_vm0, %v1956_v60  ;;  %2136 = vmatpush3.bf16.msra.mxu0 %v2385_v11 }
  0x6d   : > { %2137 = vmatprep.subr.bf16.mxu0 %v2386_v12 }
  0x70   : > { %2138 = vmatpush3.bf16.msra.mxu0 %v2388_v13 }
  0x71   : > { %2139 = vmatprep.subr.bf16.mxu0 %v2390_v14 }
  0x73   : > { %2224 = vmatmul.mubr.msk.bf16.gmra.mrb[44].mxu0 %vm452_vm0, %v1957_v1 }
  0x74   : > { %2140 = vmatpush3.bf16.msra.mxu0 %v2391_v15 }
  0x75   : > { %2141 = vmatprep.subr.bf16.mxu0 %v2392_v18  ;;  %v2396_v18 = vld [vmem:[%s3134_s4 + $0x110] sm:$0xff]  }
  0x78   : > { %2142 = vmatpush3.bf16.msra.mxu0 %v2393_v19 }
  0xee   : > { %v511_v42 = vpop.f32.mrb[0].mxu0  ;;  %v624_v43 = vpop.f32.mrb[0].mxu1 }
  0xef   : > { %v513_v44 = vpop.f32.mrb[1].mxu0  ;;  %v626_v46 = vpop.f32.mrb[1].mxu1 }
  0xf0   : > { %v515_v48 = vpop.f32.mrb[2].mxu0  ;;  %v628_v50 = vpop.f32.mrb[2].mxu1 }
  0xf1   : > { %v800_v52 = vpack.c.bf16 %v515_v48, %v511_v42  ;;  %v517_v53 = vpop.f32.mrb[3].mxu0  ;;  %v802_v54 = vpack.c.bf16 %v628_v50, %v624_v43  ;;  %v630_v55 = vpop.f32.mrb[3].mxu1  ;;  %v2398_v42 = vld [vmem:[%s3134_s4 + $0x120] sm:$0xff]  }
  0xf2   : > { %v801_v56 = vpack.c.bf16 %v517_v53, %v513_v44  ;;  %v803_v57 = vpack.c.bf16 %v630_v55, %v626_v46 }
  0xf3   : > { %v907_v58 = vadd.bf16 %v2796_v45, %v800_v52  ;;  %v909_v59 = vadd.bf16 %v2799_v47, %v802_v54 }
  0xf4   : > { %v908_v60 = vadd.bf16 %v2802_v49, %v801_v56  ;;  %v910_v61 = vadd.bf16 %v2805_v51, %v803_v57  ;;  %v2399_v57 = vld [vmem:[%s3134_s4 + $0x128] sm:$0xff]  }
  0xf5   : > { %v949_v62 = vmax.bf16 %v2490_v2, %v909_v59  ;;  %v947_v4 = vmax.bf16 %v2490_v2, %v907_v58 }
  0xf6   : > { %v521_v63 = vpop.f32.mrb[4].mxu0  ;;  %v634_v0 = vpop.f32.mrb[4].mxu1  ;;  %v948_v1 = vmax.bf16 %v2490_v2, %v908_v60  ;;  %v950_v3 = vmax.bf16 %v2490_v2, %v910_v61 }
  0xf7   : > { %v523_v5 = vpop.f32.mrb[5].mxu0  ;;  %v636_v6 = vpop.f32.mrb[5].mxu1 }
  0xf8   : > { %v525_v8 = vpop.f32.mrb[6].mxu0  ;;  %1346 = vmatprep.mubr.bf16.mxu1 %v948_v1  ;;  %v638_v9 = vpop.f32.mrb[6].mxu1  ;;  %1443 = vmatprep.mubr.bf16.mxu0 %v950_v3 }
  0xf9   : > { %v805_v10 = vpack.c.bf16 %v525_v8, %v521_v63  ;;  %v527_v11 = vpop.f32.mrb[7].mxu0  ;;  %1347 = vmatmul.mubr.bf16.vlgmr.msra.gmra.mrb[32].mxu1 %v947_v4  ;;  %v807_v12 = vpack.c.bf16 %v638_v9, %v634_v0  ;;  %v640_v13 = vpop.f32.mrb[7].mxu1  ;;  %1444 = vmatmul.mubr.bf16.vlgmr.msra.gmra.mrb[48].mxu0 %v949_v62 }
  0xfa   : > { %v806_v14 = vpack.c.bf16 %v527_v11, %v523_v5  ;;  %2228 = vmatpush3.bf16.msra.mxu1 %v2784_v20  ;;  %v808_v15 = vpack.c.bf16 %v640_v13, %v636_v6  ;;  %v2400_v5 = vld [vmem:[%s3134_s4 + $0x130] sm:$0xff]  }
  0xfb   : > { %v912_v16 = vadd.bf16 %v2796_v45, %v805_v10  ;;  %v914_v17 = vadd.bf16 %v2799_v47, %v807_v12  ;;  %2229 = vmatprep.subr.bf16.mxu1 %v2395_v7 }
  0xfc   : > { %v913_v19 = vadd.bf16 %v2802_v49, %v806_v14  ;;  %v915_v21 = vadd.bf16 %v2805_v51, %v808_v15 }
  0xfd   : > { %v954_v22 = vmax.bf16 %v2490_v2, %v914_v17  ;;  %v952_v30 = vmax.bf16 %v2490_v2, %v912_v16  ;;  %v2401_v16 = vld [vmem:[%s3134_s4 + $0x138] sm:$0xff]  }
  0xfe   : > { %v531_v23 = vpop.f32.mrb[8].mxu0  ;;  %v644_v24 = vpop.f32.mrb[8].mxu1  ;;  %v953_v20 = vmax.bf16 %v2490_v2, %v913_v19  ;;  %2230 = vmatpush3.bf16.msra.mxu1 %v2395_v7  ;;  %v955_v27 = vmax.bf16 %v2490_v2, %v915_v21 }
  0xff   : > { %v533_v28 = vpop.f32.mrb[9].mxu0  ;;  %v646_v29 = vpop.f32.mrb[9].mxu1  ;;  %2231 = vmatprep.subr.bf16.mxu1 %v2396_v18 }
 0x100   : > { %v535_v32 = vpop.f32.mrb[10].mxu0  ;;  %1354 = vmatprep.mubr.bf16.mxu1 %v953_v20  ;;  %v648_v33 = vpop.f32.mrb[10].mxu1  ;;  %1451 = vmatprep.mubr.bf16.mxu0 %v955_v27 }
 0x101   : > { %v810_v34 = vpack.c.bf16 %v535_v32, %v531_v23  ;;  %v537_v35 = vpop.f32.mrb[11].mxu0  ;;  %1355 = vmatmul.mubr.bf16.gmra.mrb[36].mxu1 %v952_v30  ;;  %v812_v36 = vpack.c.bf16 %v648_v33, %v644_v24  ;;  %v650_v37 = vpop.f32.mrb[11].mxu1  ;;  %1452 = vmatmul.mubr.bf16.gmra.mrb[52].mxu0 %v954_v22 }
 0x102   : > { %v811_v38 = vpack.c.bf16 %v537_v35, %v533_v28  ;;  %v813_v39 = vpack.c.bf16 %v650_v37, %v646_v29  ;;  %2232 = vmatpush3.bf16.msra.mxu1 %v2396_v18 }
 0x103   : > { %v917_v40 = vadd.bf16 %v2796_v45, %v810_v34  ;;  %v919_v41 = vadd.bf16 %v2799_v47, %v812_v36  ;;  %2233 = vmatprep.subr.bf16.mxu1 %v2397_v31 }
 0x104   : > { %v918_v43 = vadd.bf16 %v2802_v49, %v811_v38  ;;  %v920_v44 = vadd.bf16 %v2805_v51, %v813_v39 }
 0x105   : > { %v959_v46 = vmax.bf16 %v2490_v2, %v919_v41  ;;  %v957_v56 = vmax.bf16 %v2490_v2, %v917_v40 }
 0x106   : > { %v541_v48 = vpop.f32.mrb[12].mxu0  ;;  %v654_v50 = vpop.f32.mrb[12].mxu1  ;;  %v958_v52 = vmax.bf16 %v2490_v2, %v918_v43  ;;  %v960_v53 = vmax.bf16 %v2490_v2, %v920_v44  ;;  %2234 = vmatpush3.bf16.msra.mxu1 %v2397_v31 }
 0x107   : > { %v543_v54 = vpop.f32.mrb[13].mxu0  ;;  %v656_v55 = vpop.f32.mrb[13].mxu1  ;;  %2235 = vmatprep.subr.bf16.mxu1 %v2398_v42 }
 0x108   : > { %v545_v58 = vpop.f32.mrb[14].mxu0  ;;  %1362 = vmatprep.mubr.bf16.mxu1 %v958_v52  ;;  %v658_v59 = vpop.f32.mrb[14].mxu1  ;;  %1459 = vmatprep.mubr.bf16.mxu0 %v960_v53 }
 0x109   : > { %v815_v60 = vpack.c.bf16 %v545_v58, %v541_v48  ;;  %v547_v61 = vpop.f32.mrb[15].mxu0  ;;  %1363 = vmatmul.mubr.bf16.gmra.mrb[40].mxu1 %v957_v56  ;;  %v817_v62 = vpack.c.bf16 %v658_v59, %v654_v50  ;;  %v660_v63 = vpop.f32.mrb[15].mxu1  ;;  %1460 = vmatmul.mubr.bf16.gmra.mrb[56].mxu0 %v959_v46 }
 0x10a   : > { %v816_v0 = vpack.c.bf16 %v547_v61, %v543_v54  ;;  %v818_v1 = vpack.c.bf16 %v660_v63, %v656_v55  ;;  %2236 = vmatpush3.bf16.msra.mxu1 %v2398_v42 }
 0x10b   : > { %v922_v3 = vadd.bf16 %v2796_v45, %v815_v60  ;;  %v924_v4 = vadd.bf16 %v2799_v47, %v817_v62  ;;  %2237 = vmatprep.subr.bf16.mxu1 %v2399_v57 }
 0x10c   : > { %v923_v6 = vadd.bf16 %v2802_v49, %v816_v0  ;;  %v925_v7 = vadd.bf16 %v2805_v51, %v818_v1 }
 0x10d   : > { %v964_v8 = vmax.bf16 %v2490_v2, %v924_v4  ;;  %v962_v15 = vmax.bf16 %v2490_v2, %v922_v3 }
 0x10e   : > { %v551_v9 = vpop.f32.mrb[16].mxu0  ;;  %v664_v10 = vpop.f32.mrb[16].mxu1  ;;  %v963_v11 = vmax.bf16 %v2490_v2, %v923_v6  ;;  %v965_v12 = vmax.bf16 %v2490_v2, %v925_v7  ;;  %2238 = vmatpush3.bf16.msra.mxu1 %v2399_v57 }
 0x10f   : > { %v553_v13 = vpop.f32.mrb[17].mxu0  ;;  %v666_v14 = vpop.f32.mrb[17].mxu1  ;;  %2239 = vmatprep.subr.bf16.mxu1 %v2400_v5 }
 0x110   : > { %v555_v17 = vpop.f32.mrb[18].mxu0  ;;  %1370 = vmatprep.mubr.bf16.mxu1 %v963_v11  ;;  %v668_v18 = vpop.f32.mrb[18].mxu1  ;;  %1467 = vmatprep.mubr.bf16.mxu0 %v965_v12 }
 0x111   : > { %v820_v19 = vpack.c.bf16 %v555_v17, %v551_v9  ;;  %v557_v21 = vpop.f32.mrb[19].mxu0  ;;  %1371 = vmatmul.mubr.bf16.gmra.mrb[44].mxu1 %v962_v15  ;;  %v822_v22 = vpack.c.bf16 %v668_v18, %v664_v10  ;;  %v670_v23 = vpop.f32.mrb[19].mxu1  ;;  %1468 = vmatmul.mubr.bf16.gmra.mrb[60].mxu0 %v964_v8 }
 0x112   : > { %v821_v24 = vpack.c.bf16 %v557_v21, %v553_v13  ;;  %v823_v20 = vpack.c.bf16 %v670_v23, %v666_v14  ;;  %2240 = vmatpush3.bf16.msra.mxu1 %v2400_v5  ;;  %v871_v21 = vpack.c.bf16 %v2790_v25, %v2790_v25 }
 0x113   : > { %v927_v27 = vadd.bf16 %v2796_v45, %v820_v19  ;;  %v929_v28 = vadd.bf16 %v2799_v47, %v822_v22  ;;  %2241 = vmatprep.subr.bf16.mxu1 %v2401_v16 }
 0x114   : > { %v928_v29 = vadd.bf16 %v2802_v49, %v821_v24  ;;  %v930_v30 = vadd.bf16 %v2805_v51, %v823_v20 }
 0x115   : > { %v969_v31 = vmax.bf16 %v2490_v2, %v929_v28  ;;  %v967_v38 = vmax.bf16 %v2490_v2, %v927_v27 }
 0x116   : > { %v561_v32 = vpop.f32.mrb[20].mxu0  ;;  %v674_v33 = vpop.f32.mrb[20].mxu1  ;;  %v968_v34 = vmax.bf16 %v2490_v2, %v928_v29  ;;  %v970_v35 = vmax.bf16 %v2490_v2, %v930_v30  ;;  %2242 = vmatpush3.bf16.msra.mxu1 %v2401_v16 }
 0x117   : > { %v563_v36 = vpop.f32.mrb[21].mxu0  ;;  %v676_v37 = vpop.f32.mrb[21].mxu1 }
 0x118   : > { %v565_v39 = vpop.f32.mrb[22].mxu0  ;;  %1378 = vmatprep.mubr.bf16.mxu1 %v968_v34  ;;  %v678_v40 = vpop.f32.mrb[22].mxu1  ;;  %1475 = vmatprep.mubr.bf16.mxu0 %v970_v35 }
 0x119   : > { %v825_v41 = vpack.c.bf16 %v565_v39, %v561_v32  ;;  %v567_v42 = vpop.f32.mrb[23].mxu0  ;;  %1379 = vmatmul.mubr.bf16.gmra.mrb[48].mxu1 %v967_v38  ;;  %v827_v43 = vpack.c.bf16 %v678_v40, %v674_v33  ;;  %v680_v44 = vpop.f32.mrb[23].mxu1  ;;  %1476 = vmatmul.mubr.bf16.gmra.mrb[64].mxu0 %v969_v31  ;;  %v901_v33 = vpack.i.b16 %v871_v21, %v871_v21 }
 0x11a   : > { %v826_v46 = vpack.c.bf16 %v567_v42, %v563_v36  ;;  %v828_v48 = vpack.c.bf16 %v680_v44, %v676_v37 }
 0x11b   : > { %v932_v50 = vadd.bf16 %v2796_v45, %v825_v41  ;;  %v934_v52 = vadd.bf16 %v2799_v47, %v827_v43  ;;  %v906_v40 = vrot.slane %v901_v33, %v2792_v26 }
 0x11c   : > { %v933_v53 = vadd.bf16 %v2802_v49, %v826_v46  ;;  %v935_v54 = vadd.bf16 %v2805_v51, %v828_v48 }
 0x11d   : > { %v974_v55 = vmax.bf16 %v2490_v2, %v934_v52  ;;  %v972_v62 = vmax.bf16 %v2490_v2, %v932_v50 }
 0x11e   : > { %v571_v56 = vpop.f32.mrb[24].mxu0  ;;  %v684_v57 = vpop.f32.mrb[24].mxu1  ;;  %v973_v58 = vmax.bf16 %v2490_v2, %v933_v53  ;;  %v975_v59 = vmax.bf16 %v2490_v2, %v935_v54 }
 0x11f   : > { %v573_v60 = vpop.f32.mrb[25].mxu0  ;;  %v686_v61 = vpop.f32.mrb[25].mxu1 }
 0x120   : > { %v575_v63 = vpop.f32.mrb[26].mxu0  ;;  %1386 = vmatprep.mubr.bf16.mxu1 %v973_v58  ;;  %v688_v0 = vpop.f32.mrb[26].mxu1  ;;  %1483 = vmatprep.mubr.bf16.mxu0 %v975_v59 }
 0x121   : > { %v830_v1 = vpack.c.bf16 %v575_v63, %v571_v56  ;;  %v577_v3 = vpop.f32.mrb[27].mxu0  ;;  %1387 = vmatmul.mubr.bf16.gmra.mrb[52].mxu1 %v972_v62  ;;  %v832_v4 = vpack.c.bf16 %v688_v0, %v684_v57  ;;  %v690_v5 = vpop.f32.mrb[27].mxu1  ;;  %1484 = vmatmul.mubr.bf16.gmra.mrb[68].mxu0 %v974_v55 }
 0x122   : > { %v831_v6 = vpack.c.bf16 %v577_v3, %v573_v60  ;;  %v833_v7 = vpack.c.bf16 %v690_v5, %v686_v61 }
 0x123   : > { %v937_v8 = vadd.bf16 %v2796_v45, %v830_v1  ;;  %v939_v9 = vadd.bf16 %v2799_v47, %v832_v4 }
 0x124   : > { %v938_v10 = vadd.bf16 %v2802_v49, %v831_v6  ;;  %v940_v11 = vadd.bf16 %v2805_v51, %v833_v7 }
 0x125   : > { %v979_v12 = vmax.bf16 %v2490_v2, %v939_v9  ;;  %v977_v19 = vmax.bf16 %v2490_v2, %v937_v8 }
 0x126   : > { %v581_v13 = vpop.f32.mrb[28].mxu0  ;;  %v694_v14 = vpop.f32.mrb[28].mxu1  ;;  %v978_v15 = vmax.bf16 %v2490_v2, %v938_v10  ;;  %v980_v16 = vmax.bf16 %v2490_v2, %v940_v11 }
 0x127   : > { %v583_v17 = vpop.f32.mrb[29].mxu0  ;;  %v696_v18 = vpop.f32.mrb[29].mxu1 }
 0x128   : > { %v585_v22 = vpop.f32.mrb[30].mxu0  ;;  %1394 = vmatprep.mubr.bf16.mxu1 %v978_v15  ;;  %v698_v23 = vpop.f32.mrb[30].mxu1  ;;  %1491 = vmatprep.mubr.bf16.mxu0 %v980_v16 }
 0x129   : > { %v835_v24 = vpack.c.bf16 %v585_v22, %v581_v13  ;;  %v587_v20 = vpop.f32.mrb[31].mxu0  ;;  %1395 = vmatmul.mubr.bf16.gmra.mrb[56].mxu1 %v977_v19  ;;  %v837_v27 = vpack.c.bf16 %v698_v23, %v694_v14  ;;  %v700_v28 = vpop.f32.mrb[31].mxu1  ;;  %1492 = vmatmul.mubr.bf16.gmra.mrb[72].mxu0 %v979_v12 }
 0x12a   : > { %v836_v29 = vpack.c.bf16 %v587_v20, %v583_v17  ;;  %v838_v30 = vpack.c.bf16 %v700_v28, %v696_v18  ;;  %v2907_v18 = vld [vmem:[%s3135_s5] ss:$0 sm:$0xff] }
 0x12b   : > { %v942_v31 = vadd.bf16 %v2796_v45, %v835_v24  ;;  %v944_v32 = vadd.bf16 %v2799_v47, %v837_v27 }
 0x12c   : > { %v943_v34 = vadd.bf16 %v2802_v49, %v836_v29  ;;  %v945_v25 = vadd.bf16 %v2805_v51, %v838_v30 }
 0x12d   : > { %v984_v35 = vmax.bf16 %v2490_v2, %v944_v32  ;;  %v982_v41 = vmax.bf16 %v2490_v2, %v942_v31 }
 0x12e   : > { %v2213_v36 = vpop.f32.mrb[32].mxu0  ;;  %v983_v37 = vmax.bf16 %v2490_v2, %v943_v34  ;;  %v985_v38 = vmax.bf16 %v2490_v2, %v945_v25 }
 0x12f   : > { %v737_v39 = vpop.f32.mrb[33].mxu0 }
 0x130   : > { %v2214_v45 = vpop.f32.mrb[34].mxu0  ;;  %1402 = vmatprep.mubr.bf16.mxu1 %v983_v37  ;;  %1499 = vmatprep.mubr.bf16.mxu0 %v985_v38 }
 0x131   : > { %v809_v47 = vpack.c.bf16 %v2214_v45, %v2213_v36  ;;  %v740_v42 = vpop.f32.mrb[35].mxu0  ;;  %1403 = vmatmul.mubr.bf16.gmra.mrb[60].mxu1 %v982_v41  ;;  %1500 = vmatmul.mubr.bf16.gmra.mrb[76].mxu0 %v984_v35 }
 0x132   : > { %v804_v49 = vpack.c.bf16 %v740_v42, %v737_v39 }
 0x133   : > { %v916_v51 = vadd.bf16 %v906_v40, %v809_v47 }
 0x134   : > { %v911_v43 = vadd.bf16 %v906_v40, %v804_v49 }
 0x135   : > { %v956_v48 = vmax.bf16 %v2490_v2, %v916_v51 }
 0x136   : > { %v2217_v44 = vpop.f32.mrb[36].mxu0  ;;  %v951_v46 = vmax.bf16 %v2490_v2, %v911_v43 }
 0x137   : > { %v753_v50 = vpop.f32.mrb[37].mxu0 }
 0x138   : > { %v2218_v52 = vpop.f32.mrb[38].mxu0  ;;  %2243 = vmatprep.mubr.bf16.mxu1 %v951_v46 }
 0x139   : > { %v819_v26 = vpack.c.bf16 %v2218_v52, %v2217_v44  ;;  %v756_v53 = vpop.f32.mrb[39].mxu0  ;;  %2244 = vmatmul.mubr.bf16.vlgmr.msra.gmra.mrb[64].mxu1 %v956_v48 }
 0x13a   : > { %v814_v54 = vpack.c.bf16 %v756_v53, %v753_v50 }
 0x13b   : > { %v926_v55 = vadd.bf16 %v906_v40, %v819_v26 }
 0x13c   : > { %v921_v56 = vadd.bf16 %v906_v40, %v814_v54 }
 0x13d   : > { %v966_v60 = vmax.bf16 %v2490_v2, %v926_v55 }
 0x13e   : > { %v2221_v57 = vpop.f32.mrb[40].mxu0  ;;  %v961_v58 = vmax.bf16 %v2490_v2, %v921_v56 }
 0x13f   : > { %v769_v59 = vpop.f32.mrb[41].mxu0 }
 0x140   : > { %v2222_v61 = vpop.f32.mrb[42].mxu0  ;;  %2247 = vmatprep.mubr.bf16.mxu1 %v961_v58 }
 0x141   : > { %v829_v62 = vpack.c.bf16 %v2222_v61, %v2221_v57  ;;  %v772_v63 = vpop.f32.mrb[43].mxu0  ;;  %2248 = vmatmul.mubr.bf16.gmra.mrb[68].mxu1 %v966_v60 }
 0x142   : > { %v824_v0 = vpack.c.bf16 %v772_v63, %v769_v59 }
 0x143   : > { %v936_v1 = vadd.bf16 %v906_v40, %v829_v62 }
 0x144   : > { %v931_v3 = vadd.bf16 %v906_v40, %v824_v0 }
 0x145   : > { %v976_v7 = vmax.bf16 %v2490_v2, %v936_v1 }
 0x146   : > { %v2225_v4 = vpop.f32.mrb[44].mxu0  ;;  %v971_v5 = vmax.bf16 %v2490_v2, %v931_v3 }
 0x147   : > { %v785_v6 = vpop.f32.mrb[45].mxu0 }
 0x148   : > { %v2226_v8 = vpop.f32.mrb[46].mxu0  ;;  %2251 = vmatprep.mubr.bf16.mxu1 %v971_v5 }
 0x149   : > { %v839_v9 = vpack.c.bf16 %v2226_v8, %v2225_v4  ;;  %v788_v10 = vpop.f32.mrb[47].mxu0  ;;  %2252 = vmatmul.mubr.bf16.gmra.mrb[72].mxu1 %v976_v7 }
 0x14a   : > { %v834_v11 = vpack.c.bf16 %v788_v10, %v785_v6 }
 0x14b   : > { %v946_v12 = vadd.bf16 %v906_v40, %v839_v9 }
 0x14c   : > { %v941_v13 = vadd.bf16 %v906_v40, %v834_v11 }
 0x14d   : > { %v986_v15 = vmax.bf16 %v2490_v2, %v946_v12 }
 0x14e   : > { %v981_v14 = vmax.bf16 %v2490_v2, %v941_v13 }
 0x150   : > { %2255 = vmatprep.mubr.bf16.mxu1 %v981_v14 }
 0x151   : > { %2256 = vmatmul.mubr.bf16.gmra.mrb[76].mxu1 %v986_v15 }
 0x1cc   : > { %v2079_v16 = vpop.f32.mrb[32].mxu1  ;;  %v2143_v17 = vpop.f32.mrb[48].mxu0 }
 0x1cd   : > { %v2080_v19 = vpop.f32.mrb[33].mxu1  ;;  %v2144_v21 = vpop.f32.mrb[49].mxu0 }
 0x1ce   : > { %v2081_v22 = vadd.f32 %v2080_v19, %v2079_v16  ;;  %v2082_v23 = vpop.f32.mrb[34].mxu1  ;;  %v2145_v24 = vadd.f32 %v2144_v21, %v2143_v17  ;;  %v2146_v20 = vpop.f32.mrb[50].mxu0 }
 0x1cf   : > { %v2083_v27 = vpop.f32.mrb[35].mxu1  ;;  %v2147_v28 = vpop.f32.mrb[51].mxu0 }
 0x1d0   : > { %v1349_v29 = vadd.f32 %v2081_v22, %v2907_v18  ;;  %v2084_v2 = vadd.f32 %v2083_v27, %v2082_v23  ;;  %v2148_v30 = vadd.f32 %v2147_v28, %v2146_v20 }
 0x1d2   : > { %v1352_v31 = vadd.f32 %v2084_v2, %v2907_v18  ;;  %v2911_v32 = vadd.f32 %v2145_v24, %v1349_v29 }
 0x1d4   : > { %v2085_v33 = vpop.f32.mrb[36].mxu1  ;;  %v2149_v34 = vpop.f32.mrb[52].mxu0  ;;  %v2913_v25 = vadd.f32 %v2148_v30, %v1352_v31 }
 0x1d5   : > { %v2086_v35 = vpop.f32.mrb[37].mxu1  ;;  %v2150_v36 = vpop.f32.mrb[53].mxu0 }
 0x1d6   : > { %v2087_v37 = vadd.f32 %v2086_v35, %v2085_v33  ;;  %v2088_v38 = vpop.f32.mrb[38].mxu1  ;;  %v2151_v39 = vadd.f32 %v2150_v36, %v2149_v34  ;;  %v2152_v40 = vpop.f32.mrb[54].mxu0 }
 0x1d7   : > { %v2089_v41 = vpop.f32.mrb[39].mxu1  ;;  %v2153_v45 = vpop.f32.mrb[55].mxu0 }
 0x1d8   : > { %v1357_v47 = vadd.f32 %v2087_v37, %v2907_v18  ;;  %v2090_v42 = vadd.f32 %v2089_v41, %v2088_v38  ;;  %v2154_v49 = vadd.f32 %v2153_v45, %v2152_v40 }
 0x1da   : > { %v1360_v51 = vadd.f32 %v2090_v42, %v2907_v18  ;;  %v2917_v43 = vadd.f32 %v2151_v39, %v1357_v47 }
 0x1dc   : > { %v2091_v44 = vpop.f32.mrb[40].mxu1  ;;  %v2155_v46 = vpop.f32.mrb[56].mxu0  ;;  %v2919_v48 = vadd.f32 %v2154_v49, %v1360_v51 }
 0x1dd   : > { %v2092_v50 = vpop.f32.mrb[41].mxu1  ;;  %v2156_v52 = vpop.f32.mrb[57].mxu0 }
 0x1de   : > { %v2093_v26 = vadd.f32 %v2092_v50, %v2091_v44  ;;  %v2094_v53 = vpop.f32.mrb[42].mxu1  ;;  %v2157_v54 = vadd.f32 %v2156_v52, %v2155_v46  ;;  %v2158_v55 = vpop.f32.mrb[58].mxu0 }
 0x1df   : > { %v2095_v56 = vpop.f32.mrb[43].mxu1  ;;  %v2159_v57 = vpop.f32.mrb[59].mxu0 }
 0x1e0   : > { %v1365_v58 = vadd.f32 %v2093_v26, %v2907_v18  ;;  %v2096_v59 = vadd.f32 %v2095_v56, %v2094_v53  ;;  %v2160_v60 = vadd.f32 %v2159_v57, %v2158_v55 }
 0x1e2   : > { %v1368_v61 = vadd.f32 %v2096_v59, %v2907_v18  ;;  %v2923_v62 = vadd.f32 %v2157_v54, %v1365_v58 }
 0x1e4   : > { %v2097_v63 = vpop.f32.mrb[44].mxu1  ;;  %v2161_v0 = vpop.f32.mrb[60].mxu0  ;;  %v2925_v1 = vadd.f32 %v2160_v60, %v1368_v61 }
 0x1e5   : > { %v2098_v3 = vpop.f32.mrb[45].mxu1  ;;  %v2162_v4 = vpop.f32.mrb[61].mxu0 }
 0x1e6   : > { %v2099_v5 = vadd.f32 %v2098_v3, %v2097_v63  ;;  %v2100_v6 = vpop.f32.mrb[46].mxu1  ;;  %v2163_v7 = vadd.f32 %v2162_v4, %v2161_v0  ;;  %v2164_v8 = vpop.f32.mrb[62].mxu0 }
 0x1e7   : > { %v2101_v9 = vpop.f32.mrb[47].mxu1  ;;  %v2165_v10 = vpop.f32.mrb[63].mxu0 }
 0x1e8   : > { %v1373_v11 = vadd.f32 %v2099_v5, %v2907_v18  ;;  %v2102_v12 = vadd.f32 %v2101_v9, %v2100_v6  ;;  %v2166_v13 = vadd.f32 %v2165_v10, %v2164_v8 }
 0x1ea   : > { %v1376_v14 = vadd.f32 %v2102_v12, %v2907_v18  ;;  %v2929_v15 = vadd.f32 %v2163_v7, %v1373_v11 }
 0x1ec   : > { %v2103_v16 = vpop.f32.mrb[48].mxu1  ;;  %v2167_v17 = vpop.f32.mrb[64].mxu0  ;;  %v2931_v19 = vadd.f32 %v2166_v13, %v1376_v14 }
 0x1ed   : > { %v2104_v21 = vpop.f32.mrb[49].mxu1  ;;  %v2168_v22 = vpop.f32.mrb[65].mxu0 }
 0x1ee   : > { %v2105_v23 = vadd.f32 %v2104_v21, %v2103_v16  ;;  %v2106_v24 = vpop.f32.mrb[50].mxu1  ;;  %v2169_v20 = vadd.f32 %v2168_v22, %v2167_v17  ;;  %v2170_v27 = vpop.f32.mrb[66].mxu0 }
 0x1ef   : > { %v2107_v28 = vpop.f32.mrb[51].mxu1  ;;  %v2171_v29 = vpop.f32.mrb[67].mxu0 }
 0x1f0   : > { %v1381_v2 = vadd.f32 %v2105_v23, %v2907_v18  ;;  %v2108_v30 = vadd.f32 %v2107_v28, %v2106_v24  ;;  %v2172_v31 = vadd.f32 %v2171_v29, %v2170_v27  ;;  %v1607_v29 = vld [vmem:[%s2957_s7 + $0x10] sm:$0xff] }
 0x1f2   : > { %v1384_v33 = vadd.f32 %v2108_v30, %v2907_v18  ;;  %v2935_v34 = vadd.f32 %v2169_v20, %v1381_v2 }
 0x1f4   : > { %v2109_v35 = vpop.f32.mrb[52].mxu1  ;;  %v2173_v36 = vpop.f32.mrb[68].mxu0  ;;  %v2937_v37 = vadd.f32 %v2172_v31, %v1384_v33  ;;  %v1605_v33 = vld [vmem:[%s2957_s7] sm:$0xff] }
 0x1f5   : > { %v2110_v38 = vpop.f32.mrb[53].mxu1  ;;  %v2174_v39 = vpop.f32.mrb[69].mxu0 }
 0x1f6   : > { %v2111_v40 = vadd.f32 %v2110_v38, %v2109_v35  ;;  %v2112_v41 = vpop.f32.mrb[54].mxu1  ;;  %v2175_v45 = vadd.f32 %v2174_v39, %v2173_v36  ;;  %v2176_v47 = vpop.f32.mrb[70].mxu0  ;;  %v1608_v38 = vld [vmem:[%s2957_s7 + $0x18] sm:$0xff] }
 0x1f7   : > { %v2113_v42 = vpop.f32.mrb[55].mxu1  ;;  %v2177_v49 = vpop.f32.mrb[71].mxu0 }
 0x1f8   : > { %v1389_v51 = vadd.f32 %v2111_v40, %v2907_v18  ;;  %v2114_v44 = vadd.f32 %v2113_v42, %v2112_v41  ;;  %v2178_v46 = vadd.f32 %v2177_v49, %v2176_v47  ;;  %v1606_v41 = vld [vmem:[%s2957_s7 + $0x8] sm:$0xff] }
 0x1fa   : > { %v1392_v50 = vadd.f32 %v2114_v44, %v2907_v18  ;;  %v2941_v52 = vadd.f32 %v2175_v45, %v1389_v51  ;;  %v1609_v51 = vld [vmem:[%s2957_s7 + $0x20] sm:$0xff] }
 0x1fc   : > { %v2115_v26 = vpop.f32.mrb[56].mxu1  ;;  %v2179_v53 = vpop.f32.mrb[72].mxu0  ;;  %v2943_v54 = vadd.f32 %v2178_v46, %v1392_v50  ;;  %v1612_v50 = vld [vmem:[%s2957_s7 + $0x38] sm:$0xff] }
 0x1fd   : > { %v2116_v55 = vpop.f32.mrb[57].mxu1  ;;  %v2180_v56 = vpop.f32.mrb[73].mxu0 }
 0x1fe   : > { %v2117_v57 = vadd.f32 %v2116_v55, %v2115_v26  ;;  %v2118_v58 = vpop.f32.mrb[58].mxu1  ;;  %v2181_v59 = vadd.f32 %v2180_v56, %v2179_v53  ;;  %v2182_v60 = vpop.f32.mrb[74].mxu0  ;;  %v1610_v56 = vld [vmem:[%s2957_s7 + $0x28] sm:$0xff] }
 0x1ff   : > { %v2119_v61 = vpop.f32.mrb[59].mxu1  ;;  %v2183_v63 = vpop.f32.mrb[75].mxu0 }
 0x200   : > { %v1397_v0 = vadd.f32 %v2117_v57, %v2907_v18  ;;  %v2120_v3 = vadd.f32 %v2119_v61, %v2118_v58  ;;  %v2184_v4 = vadd.f32 %v2183_v63, %v2182_v60 }
 0x202   : > { %v1400_v5 = vadd.f32 %v2120_v3, %v2907_v18  ;;  %v2947_v6 = vadd.f32 %v2181_v59, %v1397_v0  ;;  %v1616_v3 = vld [vmem:[%s2957_s7 + $0x58] sm:$0xff] }
 0x204   : > { %v2121_v7 = vpop.f32.mrb[60].mxu1  ;;  %v2185_v8 = vpop.f32.mrb[76].mxu0  ;;  %v2949_v9 = vadd.f32 %v2184_v4, %v1400_v5 }
 0x205   : > { %v2122_v10 = vpop.f32.mrb[61].mxu1  ;;  %v2186_v11 = vpop.f32.mrb[77].mxu0 }
 0x206   : > { %v2123_v12 = vadd.f32 %v2122_v10, %v2121_v7  ;;  %v2124_v13 = vpop.f32.mrb[62].mxu1  ;;  %v2187_v14 = vadd.f32 %v2186_v11, %v2185_v8  ;;  %v2188_v16 = vpop.f32.mrb[78].mxu0  ;;  %v1614_v8 = vld [vmem:[%s2957_s7 + $0x48] sm:$0xff] }
 0x207   : > { %v2125_v17 = vpop.f32.mrb[63].mxu1  ;;  %v2189_v21 = vpop.f32.mrb[79].mxu0 }
 0x208   : > { %v1405_v22 = vadd.f32 %v2123_v12, %v2907_v18  ;;  %v2126_v23 = vadd.f32 %v2125_v17, %v2124_v13  ;;  %v2190_v24 = vadd.f32 %v2189_v21, %v2188_v16  ;;  %v1620_v21 = vld [vmem:[%s2957_s7 + $0x78] sm:$0xff] }
 0x20a   : > { %v1408_v20 = vadd.f32 %v2126_v23, %v2907_v18  ;;  %v2960_v27 = vadd.f32 %v2187_v14, %v1405_v22 }
 0x20c   : > { %v2245_v28 = vpop.f32.mrb[64].mxu1  ;;  %v2963_v2 = vadd.f32 %v2190_v24, %v1408_v20  ;;  %v1618_v20 = vld [vmem:[%s2957_s7 + $0x68] sm:$0xff] }
 0x20d   : > { %v1551_v30 = vadd.f32 %v2245_v28, %v2917_v43  ;;  %v1542_v31 = vpop.f32.mrb[65].mxu1 }
 0x20e   : > { %v1543_v35 = vadd.f32 %v1542_v31, %v2911_v32  ;;  %v2246_v36 = vpop.f32.mrb[66].mxu1 }
 0x20f   : > { %v1623_v39 = vadd.f32 %v1607_v29, %v1551_v30  ;;  %v1554_v18 = vadd.f32 %v2246_v36, %v2919_v48  ;;  %v1545_v40 = vpop.f32.mrb[67].mxu1 }
 0x210   : > { %v1621_v45 = vadd.f32 %v1605_v33, %v1543_v35  ;;  %v1546_v47 = vadd.f32 %v1545_v40, %v2913_v25  ;;  %v1611_v25 = vld [vmem:[%s2957_s7 + $0x30] sm:$0xff] }
 0x211   : > { %1640 = vst.msk [vmem:[%s2972_s21 + $0x10] sm:$0xff] %vm1637_vm1, %v1623_v39  ;;  %v1624_v32 = vadd.f32 %v1608_v38, %v1554_v18 }
 0x212   : > { %1638 = vst.msk [vmem:[%s2972_s21] sm:$0xff] %vm1637_vm1, %v1621_v45  ;;  %v1622_v43 = vadd.f32 %v1606_v41, %v1546_v47 }
 0x213   : > { %1641 = vst.msk [vmem:[%s2972_s21 + $0x18] sm:$0xff] %vm1637_vm1, %v1624_v32 }
 0x214   : > { %1639 = vst.msk [vmem:[%s2972_s21 + $0x8] sm:$0xff] %vm1637_vm1, %v1622_v43  ;;  %v2249_v48 = vpop.f32.mrb[68].mxu1 }
 0x215   : > { %v1567_v42 = vadd.f32 %v2249_v48, %v2929_v15  ;;  %v1558_v49 = vpop.f32.mrb[69].mxu1 }
 0x216   : > { %v1559_v44 = vadd.f32 %v1558_v49, %v2923_v62  ;;  %v2250_v46 = vpop.f32.mrb[70].mxu1 }
 0x217   : > { %v1627_v26 = vadd.f32 %v1611_v25, %v1567_v42  ;;  %v1570_v53 = vadd.f32 %v2250_v46, %v2931_v19  ;;  %v1561_v55 = vpop.f32.mrb[71].mxu1  ;;  %v1615_v19 = vld [vmem:[%s2957_s7 + $0x50] sm:$0xff] }
 0x218   : > { %v1625_v57 = vadd.f32 %v1609_v51, %v1559_v44  ;;  %v1562_v58 = vadd.f32 %v1561_v55, %v2925_v1  ;;  %v1613_v1 = vld [vmem:[%s2957_s7 + $0x40] sm:$0xff] }
 0x219   : > { %1644 = vst.msk [vmem:[%s2972_s21 + $0x30] sm:$0xff] %vm1637_vm1, %v1627_v26  ;;  %v1628_v15 = vadd.f32 %v1612_v50, %v1570_v53 }
 0x21a   : > { %1642 = vst.msk [vmem:[%s2972_s21 + $0x20] sm:$0xff] %vm1637_vm1, %v1625_v57  ;;  %v1626_v62 = vadd.f32 %v1610_v56, %v1562_v58 }
 0x21b   : > { %1645 = vst.msk [vmem:[%s2972_s21 + $0x38] sm:$0xff] %vm1637_vm1, %v1628_v15 }
 0x21c   : > { %1643 = vst.msk [vmem:[%s2972_s21 + $0x28] sm:$0xff] %vm1637_vm1, %v1626_v62  ;;  %v2253_v59 = vpop.f32.mrb[72].mxu1 }
 0x21d   : > { %v1583_v60 = vadd.f32 %v2253_v59, %v2941_v52  ;;  %v1574_v61 = vpop.f32.mrb[73].mxu1 }
 0x21e   : > { %v1575_v63 = vadd.f32 %v1574_v61, %v2935_v34  ;;  %v2254_v0 = vpop.f32.mrb[74].mxu1 }
 0x21f   : > { %v1631_v4 = vadd.f32 %v1615_v19, %v1583_v60  ;;  %v1586_v5 = vadd.f32 %v2254_v0, %v2943_v54  ;;  %v1577_v7 = vpop.f32.mrb[75].mxu1  ;;  %v1619_v54 = vld [vmem:[%s2957_s7 + $0x70] sm:$0xff] }
 0x220   : > { %v1629_v10 = vadd.f32 %v1613_v1, %v1575_v63  ;;  %v1578_v11 = vadd.f32 %v1577_v7, %v2937_v37  ;;  %v1617_v37 = vld [vmem:[%s2957_s7 + $0x60] sm:$0xff] }
 0x221   : > { %1648 = vst.msk [vmem:[%s2972_s21 + $0x50] sm:$0xff] %vm1637_vm1, %v1631_v4  ;;  %v1632_v52 = vadd.f32 %v1616_v3, %v1586_v5 }
 0x222   : > { %1646 = vst.msk [vmem:[%s2972_s21 + $0x40] sm:$0xff] %vm1637_vm1, %v1629_v10  ;;  %v1630_v34 = vadd.f32 %v1614_v8, %v1578_v11 }
 0x223   : > { %1649 = vst.msk [vmem:[%s2972_s21 + $0x58] sm:$0xff] %vm1637_vm1, %v1632_v52 }
 0x224   : > { %1647 = vst.msk [vmem:[%s2972_s21 + $0x48] sm:$0xff] %vm1637_vm1, %v1630_v34  ;;  %v2257_v12 = vpop.f32.mrb[76].mxu1 }
 0x225   : > { %v1599_v13 = vadd.f32 %v2257_v12, %v2960_v27  ;;  %v1590_v14 = vpop.f32.mrb[77].mxu1 }
 0x226   : > { %v1591_v16 = vadd.f32 %v1590_v14, %v2947_v6  ;;  %v2258_v17 = vpop.f32.mrb[78].mxu1  ;;  %1660 = sbr.rel (!%p2551_p4) target bundleno = 606 (0x25e), region = 48 }
 0x227   : > { %v1635_v22 = vadd.f32 %v1619_v54, %v1599_v13  ;;  %v1602_v23 = vadd.f32 %v2258_v17, %v2963_v2  ;;  %v1593_v24 = vpop.f32.mrb[79].mxu1 }
 0x228   : > { %v1633_v28 = vadd.f32 %v1617_v37, %v1591_v16  ;;  %v1594_v29 = vadd.f32 %v1593_v24, %v2949_v9 }
 0x229   : > { %1652 = vst.msk [vmem:[%s2972_s21 + $0x70] sm:$0xff] %vm1637_vm1, %v1635_v22  ;;  %v1636_v30 = vadd.f32 %v1620_v21, %v1602_v23 }
 0x22a   : > { %1650 = vst.msk [vmem:[%s2972_s21 + $0x60] sm:$0xff] %vm1637_vm1, %v1633_v28  ;;  %v1634_v27 = vadd.f32 %v1618_v20, %v1594_v29 }
 0x22b   : > { %1653 = vst.msk [vmem:[%s2972_s21 + $0x78] sm:$0xff] %vm1637_vm1, %v1636_v30 }
 0x22c   : > { %1651 = vst.msk [vmem:[%s2972_s21 + $0x68] sm:$0xff] %vm1637_vm1, %v1634_v27 }
 0x22d   : > { %s3145_s9 = smov (!%p1663_p8, %s1662_s9), 16 }
 0x22e   : > { %s2035_s14 = sshll.u32 %s3145_s9, 7 }
 0x22f   : > { %p2038_p9 = scmp.eq.s32.totalorder %s2035_s14, 0 }
 0x230   : > { %s3043_s15 = sshrl.u32 (!%p2038_p9), %s3145_s9, 4 }
 0x231   : > { %1671 = sbr.rel (%p2038_p9) target bundleno = 606 (0x25e), region = 52  ;;  %p2039_p10 = scmp.le.s32.totalorder (!%p2038_p9), %s3043_s15, 0 }
 0x238   : > { %1891 = sbr.rel (%p2039_p10) target bundleno = 585 (0x249), region = 131  ;;  %s3138_s24 = smov (!%p2039_p10), %s3037_s13 }
 0x239   : > { %s3139_s29 = smov (!%p2039_p10), %s2972_s21  ;;  %s3052_s8 = smov (!%p2039_p10), 0  }
 0x23a   : > { %s3054_s16 = smov (!%p2039_p10), 0  }
 0x23f LB: >> { %v1763_v6 = vld [vmem:[%s2464_s29] sm:$0xff]  ;;  %v1765_v9 = vld [vmem:[%s2464_s29 + $0x8] sm:$0xff]  ;;  %v1767_v2 = vld [vmem:[%s2464_s29 + $0x10] sm:$0xff]  ;;  %s1795_s17 = sadd.s32 1, %s2468_s8  ;;  %s1757_s16 = sadd.s32 1, %s2472_s16   ;;  %s2472_s16 = sphi %s3054_s16, %s1757_s16   ;;  %s2468_s8 = sphi %s3052_s8, %s3140_s8   ;;  %s2464_s29 = sphi %s3139_s29, %s1800_s29   ;;  %s2460_s24 = sphi %s3138_s24, %s1801_s24  }
 0x240   : >> { %1764 = vst [vmem:[%s2460_s24] sm:$0xff] %v1763_v6  ;;  %1766 = vst [vmem:[%s2460_s24 + $0x8] sm:$0xff] %v1765_v9  ;;  %v1769_v31 = vld [vmem:[%s2464_s29 + $0x18] sm:$0xff]  ;;  %v1771_v33 = vld [vmem:[%s2464_s29 + $0x20] sm:$0xff]  ;;  %p1796_p11 = scmp.ge.s32.totalorder %s1795_s17, %s3043_s15  ;;  %p1756_p12 = scmp.ge.s32.totalorder %s1757_s16, %s3043_s15 }
 0x241   : >> { %1768 = vst [vmem:[%s2460_s24 + $0x10] sm:$0xff] %v1767_v2  ;;  %v1773_v35 = vld [vmem:[%s2464_s29 + $0x28] sm:$0xff]  ;;  %1770 = vst [vmem:[%s2460_s24 + $0x18] sm:$0xff] %v1769_v31  ;;  %v1775_v36 = vld [vmem:[%s2464_s29 + $0x30] sm:$0xff] }
 0x242   : >> { %1772 = vst [vmem:[%s2460_s24 + $0x20] sm:$0xff] %v1771_v33  ;;  %1774 = vst [vmem:[%s2460_s24 + $0x28] sm:$0xff] %v1773_v35  ;;  %v1777_v38 = vld [vmem:[%s2464_s29 + $0x38] sm:$0xff]  ;;  %v1779_v39 = vld [vmem:[%s2464_s29 + $0x40] sm:$0xff]  ;;  %s3147_s17 = smov (%p1796_p11, %s1795_s17), 0  ;;  %1759 = sbr.rel (!%p1756_p12) target bundleno = 575 (0x23f), region = 137 }
 0x243   : >> { %1776 = vst [vmem:[%s2460_s24 + $0x30] sm:$0xff] %v1775_v36  ;;  %1778 = vst [vmem:[%s2460_s24 + $0x38] sm:$0xff] %v1777_v38  ;;  %v1781_v18 = vld [vmem:[%s2464_s29 + $0x48] sm:$0xff]  ;;  %v1783_v40 = vld [vmem:[%s2464_s29 + $0x50] sm:$0xff]  ;;  %s2040_s18 = sshll.u32 %s3147_s17, 7  ;;  %s3140_s8 = smov %s3147_s17 }
 0x244   : >> { %1780 = vst [vmem:[%s2460_s24 + $0x40] sm:$0xff] %v1779_v39  ;;  %v1785_v41 = vld [vmem:[%s2464_s29 + $0x58] sm:$0xff]  ;;  %1782 = vst [vmem:[%s2460_s24 + $0x48] sm:$0xff] %v1781_v18  ;;  %v1787_v45 = vld [vmem:[%s2464_s29 + $0x60] sm:$0xff] }
 0x245   : >> { %1784 = vst [vmem:[%s2460_s24 + $0x50] sm:$0xff] %v1783_v40  ;;  %1786 = vst [vmem:[%s2460_s24 + $0x58] sm:$0xff] %v1785_v41  ;;  %v1789_v47 = vld [vmem:[%s2464_s29 + $0x68] sm:$0xff]  ;;  %v1791_v32 = vld [vmem:[%s2464_s29 + $0x70] sm:$0xff] }
 0x246   : >> { %1788 = vst [vmem:[%s2460_s24 + $0x60] sm:$0xff] %v1787_v45  ;;  %1790 = vst [vmem:[%s2460_s24 + $0x68] sm:$0xff] %v1789_v47  ;;  %v1793_v43 = vld [vmem:[%s2464_s29 + $0x78] sm:$0xff]  ;;  %s1800_s29 = scalar_lea.vmem %s2972_s21, %s2040_s18 [#allocation2]  }
 0x247   : >> { %1792 = vst [vmem:[%s2460_s24 + $0x70] sm:$0xff] %v1791_v32  ;;  %1794 = vst [vmem:[%s2460_s24 + $0x78] sm:$0xff] %v1793_v43  ;;  %s1801_s24 = scalar_lea.vmem %s3037_s13, %s2040_s18  }
 0x249 PF: > { %s3112_s19 = sand.u32 15, %s3145_s9   ;;  %s2051_s20 = sshll.u32 %s3043_s15, 7 }
 0x24a   : > { %s1806_s26 = scalar_lea.vmem %s2972_s21, %s2051_s20 [#allocation2]   ;;  %s1808_s27 = scalar_lea.vmem %s3037_s13, %s2051_s20  }
 0x24b   : > { %p2045_p13 = scmp.le.s32.totalorder %s3112_s19, 0 }
 0x24c   : > { %s2474_s30 = smov (!%p2045_p13), %s1808_s27   ;;  %s2478_s7 = smov (!%p2045_p13), %s1806_s26  }
 0x24d   : > { %1905 = sbr.rel (%p2045_p13) target bundleno = 606 (0x25e), region = 142  ;;  %s2482_s23 = smov (!%p2045_p13), 0  }
 0x24e   : > { %s2486_s10 = smov (!%p2045_p13), 0  }
 0x254 LB: >> { %v1818_v48 = vld [vmem:[%s2480_s7] sm:$0xff]  ;;  %s1820_s9 = sadd.s32 1, %s2484_s23  ;;  %s1812_s10 = sadd.s32 1, %s2488_s10   ;;  %s2488_s10 = sphi %s2486_s10, %s1812_s10   ;;  %s2484_s23 = sphi %s2482_s23, %s2483_s23   ;;  %s2480_s7 = sphi %s2478_s7, %s1825_s7   ;;  %s2476_s30 = sphi %s2474_s30, %s1826_s30  }
 0x255   : >> { %1819 = vst [vmem:[%s2476_s30] sm:$0xff] %v1818_v48  ;;  %p1821_p0 = scmp.ge.s32.totalorder %s1820_s9, %s3112_s19  ;;  %p1811_p1 = scmp.ge.s32.totalorder %s1812_s10, %s3112_s19 }
 0x257   : >> { %s3149_s9 = smov (%p1821_p0, %s1820_s9), 0  ;;  %1814 = sbr.rel (!%p1811_p1) target bundleno = 596 (0x254), region = 148 }
 0x258   : >> { %s2046_s21 = sshll.u32 %s3149_s9, 3  ;;  %s2483_s23 = smov %s3149_s9  }
 0x259   : >> { %s1825_s7 = scalar_lea.vmem %s1806_s26, %s2046_s21 [#allocation2]   ;;  %s1826_s30 = scalar_lea.vmem %s1808_s27, %s2046_s21  }
 0x25e PF: > { %p13_p2 = scmp.ge.s32.totalorder %s2541_s25, 7   ;;  %s3141_s21 = smov %s2452_s22 }
 0x25f   : > { %s3142_s22 = smov %s2549_s28  ;;  %s3143_s23 = smov %s2541_s25 }
 0x260   :  { %15 = sbr.rel (!%p13_p2) target bundleno = 2 (0x2), region = 159 }

</bundles_post_ra>
